<compile_context>
chip_gen: v7x
topology: tpu7x:2x2x1
jax: 0.10.0
libtpu: 0.0.40
codegen_flags: <defaults>
</compile_context>

<pallas_src>
import functools

import jax
import jax.numpy as jnp
from jax.experimental import pallas as pl
from jax.experimental.pallas import tpu as pltpu

LANE = 128


# ------------------------------- helpers ------------------------------------

def _round_up(v, m):
    return (v + m - 1) // m * m


def _pad2d(x, rows, cols):
    pr, pc = rows - x.shape[0], cols - x.shape[1]
    if pr or pc:
        x = jnp.pad(x, ((0, pr), (0, pc)))
    return x


def _vmem_capacity():
    try:
        return int(pltpu.get_tpu_info().vmem_capacity_bytes)
    except Exception:
        return 64 * 1024 * 1024  # conservative (v7x-sized) fallback


_TILE_CAPS = None


def _tile_caps():
    """Generation-aware tile caps (TM, TN, TK) and an explicit VMEM limit."""
    global _TILE_CAPS
    if _TILE_CAPS is None:
        vmem = _vmem_capacity()
        if vmem >= 100 * 1024 * 1024:      # v5e / v6e: 128 MiB VMEM
            _TILE_CAPS = (512, 512, 1024, 96 * 1024 * 1024)
        else:                              # v7x: 64 MiB VMEM per TC
            _TILE_CAPS = (256, 256, 512, 48 * 1024 * 1024)
    return _TILE_CAPS


def _pick_tile(dim, cap):
    """dim is a multiple of 128; largest multiple-of-128 divisor of dim <= cap."""
    best = LANE
    n = dim // LANE
    for d in range(1, n + 1):
        if n % d == 0 and LANE * d <= cap:
            best = LANE * d
    return best


# -------------------------- tiled matmul kernel ------------------------------

def _mm_kernel(x_ref, w_ref, b_ref, o_ref, acc_ref, *, act):
    @pl.when(pl.program_id(2) == 0)
    def _():
        acc_ref[...] = jnp.zeros_like(acc_ref)

    acc_ref[...] += jnp.dot(x_ref[...], w_ref[...],
                            preferred_element_type=jnp.float32)

    @pl.when(pl.program_id(2) == pl.num_programs(2) - 1)
    def _():
        h = acc_ref[...] + b_ref[...]
        if act:
            h = jnp.maximum(h, 0.0)
        o_ref[...] = h.astype(o_ref.dtype)


def matmul_bias_act(x, w, b=None, *, act=False, out_dtype=jnp.float32):
    """out = act(x @ w + b).  x:[M,K], w:[K,N], b:[1,N]; dims multiples of 128.

    bf16 MXU operands, f32 accumulation, tiled/pipelined grid, megacore
    parallel over the output tiles.
    """
    M, K = x.shape
    K2, N = w.shape
    assert K == K2
    if b is None:
        b = jnp.zeros((1, N), jnp.float32)
    cm, cn, ck, vmem_lim = _tile_caps()
    tm, tn, tk = _pick_tile(M, cm), _pick_tile(N, cn), _pick_tile(K, ck)
    grid = (M // tm, N // tn, K // tk)
    return pl.pallas_call(
        functools.partial(_mm_kernel, act=act),
        out_shape=jax.ShapeDtypeStruct((M, N), out_dtype),
        grid_spec=pltpu.PrefetchScalarGridSpec(
            num_scalar_prefetch=0, grid=grid,
            in_specs=[
                pl.BlockSpec((tm, tk), lambda i, j, k: (i, k)),
                pl.BlockSpec((tk, tn), lambda i, j, k: (k, j)),
                pl.BlockSpec((1, tn), lambda i, j, k: (0, j)),
            ],
            out_specs=pl.BlockSpec((tm, tn), lambda i, j, k: (i, j)),
            scratch_shapes=[pltpu.VMEM((tm, tn), jnp.float32)]),
        compiler_params=pltpu.CompilerParams(
            dimension_semantics=("parallel", "parallel", "arbitrary"),
            vmem_limit_bytes=vmem_lim),
    )(x.astype(jnp.bfloat16), w.astype(jnp.bfloat16), b.astype(jnp.float32))


def gcn_layer(a_hat, h, w, b, *, act, out_dtype=jnp.float32):
    # out = act( A_hat @ (H @ W) + b );  X@W first (cheaper), then propagate.
    # TODO(synk): the two matmuls (and the L-layer encoder chain) could be
    #             fused into a single pallas_call with emit_pipeline over K.
    xw = matmul_bias_act(h, w, None, act=False, out_dtype=jnp.bfloat16)
    return matmul_bias_act(a_hat, xw, b, act=act, out_dtype=out_dtype)


# ---------------- fused EdgeDecoder MLP + structural BCE loss ----------------

def _edge_bce_kernel(feat_ref, w1_ref, b1_ref, w2_ref, b2_ref, o_ref, *, num_pos):
    # Linear -> ReLU on the concatenated [pos ; neg] edge-feature batch.
    h1 = jnp.dot(feat_ref[...], w1_ref[...],
                 preferred_element_type=jnp.float32) + b1_ref[...]
    h1 = jnp.maximum(h1, 0.0)
    # Final (edge_hidden, 1) projection as VPU multiply + lane reduction
    # (avoids a width-1 MXU matmul and a masked width-1 store).
    logits = jnp.sum(h1 * w2_ref[...], axis=-1, keepdims=True) + b2_ref[...]

    def softplus(z):
        return jnp.maximum(z, 0.0) + jnp.log(1.0 + jnp.exp(-jnp.abs(z)))

    pos = logits[:num_pos]
    neg = logits[num_pos:]
    # BCE(sigmoid(pos),1) + BCE(sigmoid(neg),0) = mean softplus(-pos) + mean softplus(neg)
    val = jnp.mean(softplus(-pos)) + jnp.mean(softplus(neg))
    o_ref[...] = jnp.full((1, LANE), val, dtype=jnp.float32)


def edge_bce_loss(feat, w1, b1, w2row, b2, num_pos):
    out = pl.pallas_call(
        functools.partial(_edge_bce_kernel, num_pos=num_pos),
        out_shape=jax.ShapeDtypeStruct((1, LANE), jnp.float32),
        in_specs=[pl.BlockSpec(memory_space=pltpu.MemorySpace.VMEM)] * 5,
        out_specs=pl.BlockSpec(memory_space=pltpu.MemorySpace.VMEM),
    )(feat.astype(jnp.bfloat16), w1.astype(jnp.bfloat16), b1, w2row, b2)
    return out[0, 0]


# ------------------- fused feature loss: sce + gamma * mse -------------------

def _feat_loss_kernel(xr_ref, xi_ref, er_ref, gr_ref, o_ref,
                      *, alpha, gamma, hid_actual):
    xr = xr_ref[...].astype(jnp.float32)
    xi = xi_ref[...].astype(jnp.float32)
    # padded feature columns are zero in both operands -> norms/dots unaffected
    xr_n = xr * jax.lax.rsqrt(jnp.sum(xr * xr, axis=-1, keepdims=True) + 1e-12)
    xi_n = xi * jax.lax.rsqrt(jnp.sum(xi * xi, axis=-1, keepdims=True) + 1e-12)
    cos = jnp.sum(xr_n * xi_n, axis=-1, keepdims=True)
    d = jnp.maximum(1.0 - cos, 0.0)        # clamp: fp rounding can push cos > 1
    if float(alpha) == 2.0:
        l = d * d
    else:
        l = d ** alpha
    sce = jnp.mean(l)

    de = er_ref[...].astype(jnp.float32) - gr_ref[...].astype(jnp.float32)
    # divide by the *unpadded* element count (padded columns contribute 0)
    mse = jnp.sum(de * de) / float(er_ref.shape[0] * hid_actual)

    o_ref[...] = jnp.full((1, LANE), sce + gamma * mse, dtype=jnp.float32)


def feat_loss(x_rec, x_init, enc_m, guide_m, *, alpha, gamma, hid_actual):
    out = pl.pallas_call(
        functools.partial(_feat_loss_kernel, alpha=alpha, gamma=gamma,
                          hid_actual=hid_actual),
        out_shape=jax.ShapeDtypeStruct((1, LANE), jnp.float32),
        in_specs=[pl.BlockSpec(memory_space=pltpu.MemorySpace.VMEM)] * 4,
        out_specs=pl.BlockSpec(memory_space=pltpu.MemorySpace.VMEM),
    )(x_rec, x_init, enc_m, guide_m)
    return out[0, 0]


# ------------------------------ JAX glue -------------------------------------

def normalize_adj(adj):
    n = adj.shape[0]
    adj = jnp.clip(adj + jnp.eye(n, dtype=adj.dtype), 0.0, 1.0)
    deg = jnp.sum(adj, axis=1)
    d_inv_sqrt = jax.lax.rsqrt(jnp.maximum(deg, 1e-12))
    return adj * d_inv_sqrt[:, None] * d_inv_sqrt[None, :]


def _glorot(key, shape):
    fan_in, fan_out = shape
    scale = jnp.sqrt(6.0 / (fan_in + fan_out))
    return jax.random.uniform(key, shape, jnp.float32, -scale, scale)


def _init_gcn_params(key, dims, pdims):
    params = []
    keys = jax.random.split(key, len(dims) - 1)
    for k, (fi, fo), (pfi, pfo) in zip(keys, zip(dims[:-1], dims[1:]),
                                       zip(pdims[:-1], pdims[1:])):
        w = _pad2d(_glorot(k, (fi, fo)), pfi, pfo)   # padded rows/cols are zero
        b = jnp.zeros((1, pfo), jnp.float32)
        params.append((w, b))
    return params


class PreModelPallas:
    """PreModel forward (mask_attr_prediction) with gcn encoder/decoder."""

    def __init__(self, key, in_dim, num_hidden, num_layers,
                 mask_rate=0.3, replace_rate=0.1, add_rate=0.4,
                 edge_hidden=64, updata_guide_model=10, decay=0.95,
                 gamma=10.0, beta=0.001, alpha_l=2.0, undirected=False):
        self.mask_rate = mask_rate
        self.replace_rate = replace_rate
        self.mask_token_rate = 1.0 - replace_rate
        self.add_rate = add_rate
        self.updata_guide_model = updata_guide_model
        self.decay = decay
        self.gamma = gamma
        self.beta = beta
        self.alpha_l = alpha_l
        self.undirected = undirected

        self.in_dim = in_dim
        self.num_hidden = num_hidden
        self.in_p = _round_up(in_dim, LANE)     # lane-dense padded feature dims
        self.hid_p = _round_up(num_hidden, LANE)
        self.eh_p = _round_up(edge_hidden, LANE)

        k_enc, k_guide, k_dec, k_e2d, k_ed1, k_ed2 = jax.random.split(key, 6)
        enc_dims = [in_dim] + [num_hidden] * num_layers
        enc_pdims = [self.in_p] + [self.hid_p] * num_layers
        self.enc_params = _init_gcn_params(k_enc, enc_dims, enc_pdims)
        self.guide_params = _init_gcn_params(k_guide, enc_dims, enc_pdims)
        self.dec_params = _init_gcn_params(k_dec, [num_hidden, in_dim],
                                           [self.hid_p, self.in_p])
        # encoder_to_decoder: Linear, bias=False
        self.enc2dec_w = _pad2d(_glorot(k_e2d, (num_hidden, num_hidden)),
                                self.hid_p, self.hid_p)
        # EdgeDecoder MLP: Linear -> ReLU -> Linear(edge_hidden, 1)
        self.edge_w1 = _pad2d(_glorot(k_ed1, (num_hidden, edge_hidden)),
                              self.hid_p, self.eh_p)
        self.edge_b1 = jnp.zeros((1, self.eh_p), jnp.float32)
        self.edge_w2 = _pad2d(_glorot(k_ed2, (edge_hidden, 1)).T, 1, self.eh_p)
        self.edge_b2 = jnp.zeros((1, 1), jnp.float32)
        self.enc_mask_token = jnp.zeros((1, in_dim), jnp.float32)
        # register(): EMA shadow of the encoder parameters
        self.shadow = jax.tree_util.tree_map(lambda p: p, self.enc_params)

    def _encode(self, a_hat_p, x_p, params, out_dtype=jnp.float32):
        # encoding=True -> activation on every layer (GraphMAE GCN convention)
        h = x_p
        n_layers = len(params)
        for li, (w, b) in enumerate(params):
            dt = out_dtype if li == n_layers - 1 else jnp.bfloat16
            h = gcn_layer(a_hat_p, h, w, b, act=True, out_dtype=dt)
        return h

    def forward(self, adj_refine, edges_refine, del_edges, x, epoch, key):
        n = x.shape[0]
        n_p = _round_up(n, LANE)
        k_perm, k_pmask, k_noise, k_add_s, k_add_d, k_neg = jax.random.split(key, 6)

        # --- encoding_mask_noise ------------------------------------------
        perm = jax.random.permutation(k_perm, n)
        num_mask = int(self.mask_rate * n)
        mask_nodes = perm[:num_mask]
        num_noise = int(self.replace_rate * num_mask)
        perm_mask = jax.random.permutation(k_pmask, num_mask)
        num_token = int(self.mask_token_rate * num_mask)
        token_nodes = mask_nodes[perm_mask[:num_token]]
        out_x = x.at[token_nodes].set(0.0)
        if num_noise > 0:
            noise_nodes = mask_nodes[perm_mask[num_mask - num_noise:]]
            noise_src = jax.random.permutation(k_noise, n)[:num_noise]
            out_x = out_x.at[noise_nodes].set(x[noise_src])
        out_x = out_x.at[token_nodes].add(self.enc_mask_token[0])

        # --- graph perturbation (add_ptb_edges) ----------------------------
        # TODO(synk): DGL add_ptb_edges/drop_edge exact semantics unavailable;
        #             approximated on a dense adjacency (delete del_edges, add
        #             int(add_rate * |E|) random edges).
        adj_ptb = adj_refine.at[del_edges[0], del_edges[1]].set(0.0)
        if self.undirected:
            adj_ptb = adj_ptb.at[del_edges[1], del_edges[0]].set(0.0)
        num_edges = edges_refine[0].shape[0]
        num_add = int(self.add_rate * num_edges)
        if num_add > 0:
            add_src = jax.random.randint(k_add_s, (num_add,), 0, n)
            add_dst = jax.random.randint(k_add_d, (num_add,), 0, n)
            adj_ptb = adj_ptb.at[add_src, add_dst].set(1.0)

        # normalize on real nodes, then zero-pad to lane-dense [n_p, n_p]
        a_ptb = _pad2d(normalize_adj(adj_ptb), n_p, n_p)
        a_ref = _pad2d(normalize_adj(adj_refine), n_p, n_p)
        x_p = _pad2d(x, n_p, self.in_p)
        out_x_p = _pad2d(out_x, n_p, self.in_p)

        # --- encoder on perturbed graph / masked features -------------------
        # TODO(synk): feat_drop / attn_drop omitted (deterministic eval semantics).
        enc_rep = self._encode(a_ptb, out_x_p, self.enc_params,
                               out_dtype=jnp.float32)

        # --- EMA guide encoder (update + guide_model_apply_shadow) ----------
        if epoch % self.updata_guide_model == 0:
            self.shadow = jax.tree_util.tree_map(
                lambda p, s: (1.0 - self.decay) * p + self.decay * s,
                self.enc_params, self.shadow)
            self.guide_params = self.shadow
        guide_rep = self._encode(a_ref, x_p, self.guide_params,
                                 out_dtype=jnp.float32)
        guide_rep = jax.lax.stop_gradient(guide_rep)     # .detach()

        # --- encoder_to_decoder ----------------------------------------------
        rep = matmul_bias_act(enc_rep, self.enc2dec_w, None, act=False,
                              out_dtype=jnp.float32)

        # --- structural reconstruction (EdgeDecoder + ce_loss, fused) --------
        pos_src, pos_dst = edges_refine
        num_pos = int(pos_src.shape[0])
        neg = jax.random.randint(k_neg, (2, num_pos), 0, n)
        # TODO(synk): edge gathers kept in JAX; a scalar-prefetch in-kernel
        #             gather would avoid the (2E, H) HBM round trip.
        src_idx = jnp.concatenate([pos_src, neg[0]])
        dst_idx = jnp.concatenate([pos_dst, neg[1]])
        feat = enc_rep[src_idx] * enc_rep[dst_idx]
        loss_struct = edge_bce_loss(feat, self.edge_w1, self.edge_b1,
                                    self.edge_w2, self.edge_b2, num_pos)

        # --- feature reconstruction ------------------------------------------
        rep = rep.at[mask_nodes].set(0.0)   # decoder is a GNN ('gcn'), not mlp/linear
        dec_w, dec_b = self.dec_params[0]
        # type_graph4recon == 'refine' -> decode on graph_refine; 1-layer GCN, no act
        recon = gcn_layer(a_ref, rep, dec_w, dec_b, act=False,
                          out_dtype=jnp.float32)

        x_rec = recon[mask_nodes]
        x_init = x_p[mask_nodes]
        loss_feat = feat_loss(x_rec, x_init,
                              enc_rep[mask_nodes], guide_rep[mask_nodes],
                              alpha=self.alpha_l, gamma=self.gamma,
                              hid_actual=self.num_hidden)
        loss = loss_feat + self.beta * loss_struct
        # no float(loss): avoid a device->host sync in the training step
        return loss, {'loss': loss}


if __name__ == "__main__":
    key = jax.random.PRNGKey(0)
    k_model, k_x, k_edges, k_fwd = jax.random.split(key, 4)

    N, IN_DIM, HIDDEN, LAYERS = 16, 32, 32, 2
    model = PreModelPallas(k_model, IN_DIM, HIDDEN, LAYERS)

    x = jax.random.normal(k_x, (N, IN_DIM), jnp.float32)

    # random undirected graph (dense adjacency, no self loops)
    ks, kd = jax.random.split(k_edges)
    src = jax.random.randint(ks, (24,), 0, N)
    dst = jax.random.randint(kd, (24,), 0, N)
    adj = jnp.zeros((N, N), jnp.float32)
    adj = adj.at[src, dst].set(1.0)
    adj = adj.at[dst, src].set(1.0)
    adj = adj * (1.0 - jnp.eye(N, dtype=jnp.float32))
    pos_src, pos_dst = jnp.nonzero(adj)
    edges_refine = (pos_src, pos_dst)
    del_edges = jnp.stack([pos_src[:4], pos_dst[:4]], axis=0)

    loss, loss_item = model.forward(adj, edges_refine, del_edges, x,
                                    epoch=0, key=k_fwd)
    jax.block_until_ready(loss)
    print("KERNEL_OK")
</pallas_src>

<mosaic_0001>
module attributes {stable_mosaic.version = 11 : i64} {
  func.func @_mm_kernel(%arg0: i32, %arg1: i32, %arg2: i32, %arg3: memref<128x128xbf16, #tpu.memory_space<vmem>>, %arg4: memref<128x128xbf16, #tpu.memory_space<vmem>>, %arg5: memref<1x128xf32, #tpu.memory_space<vmem>>, %arg6: memref<128x128xbf16, #tpu.memory_space<vmem>>, %arg7: memref<128x128xf32, #tpu.memory_space<vmem>>) attributes {dimension_semantics = [#tpu.dimension_semantics<parallel>, #tpu.dimension_semantics<parallel>, #tpu.dimension_semantics<arbitrary>], iteration_bounds = array<i64: 1, 1, 1>, scalar_prefetch = 0 : i64, scratch_operands = 1 : i64, tpu.core_type = #tpu.core_type<tc>, window_params = [{transform_indices = @transform_0, window_bounds = array<i64: 128, 128>}, {transform_indices = @transform_1, window_bounds = array<i64: 128, 128>}, {transform_indices = @transform_2, window_bounds = array<i64: 1, 128>}, {transform_indices = @transform_3, window_bounds = array<i64: 128, 128>}]} {
    %c0_i32 = arith.constant 0 : i32
    %0 = arith.cmpi eq, %arg2, %c0_i32 : i32
    %1 = arith.extui %0 : i1 to i32
    %c0_i32_0 = arith.constant 0 : i32
    %2 = arith.cmpi ne, %1, %c0_i32_0 : i32
    scf.if %2 {
      %cst_10 = arith.constant 0.000000e+00 : f32
      %12 = vector.broadcast %cst_10 : f32 to vector<128x128xf32>
      %c0_11 = arith.constant 0 : index
      %c0_12 = arith.constant 0 : index
      %13 = vector.load %arg7[%c0_11, %c0_12] : memref<128x128xf32, #tpu.memory_space<vmem>>, vector<128x128xf32>
      tpu.vector_store %arg7[%c0_11, %c0_12], %12 {strides = array<i32>} : memref<128x128xf32, #tpu.memory_space<vmem>>, vector<128x128xf32>,
    } else {
    }
    %c0 = arith.constant 0 : index
    %c0_1 = arith.constant 0 : index
    %3 = vector.load %arg7[%c0, %c0_1] : memref<128x128xf32, #tpu.memory_space<vmem>>, vector<128x128xf32>
    %c0_2 = arith.constant 0 : index
    %c0_3 = arith.constant 0 : index
    %4 = vector.load %arg3[%c0_2, %c0_3] : memref<128x128xbf16, #tpu.memory_space<vmem>>, vector<128x128xbf16>
    %c0_4 = arith.constant 0 : index
    %c0_5 = arith.constant 0 : index
    %5 = vector.load %arg4[%c0_4, %c0_5] : memref<128x128xbf16, #tpu.memory_space<vmem>>, vector<128x128xbf16>
    %cst = arith.constant dense<0.000000e+00> : vector<128x128xf32>
    %6 = tpu.matmul %4, %5, %cst {dimension_numbers = #tpu.dot_dimension_numbers<[1], [0], [0], [1], [0, 0, 1, 1], [], []>} : vector<128x128xbf16>, vector<128x128xbf16>, vector<128x128xf32> -> vector<128x128xf32>
    %7 = arith.addf %3, %6 : vector<128x128xf32>
    %c0_6 = arith.constant 0 : index
    %c0_7 = arith.constant 0 : index
    %8 = vector.load %arg7[%c0_6, %c0_7] : memref<128x128xf32, #tpu.memory_space<vmem>>, vector<128x128xf32>
    tpu.vector_store %arg7[%c0_6, %c0_7], %7 {strides = array<i32>} : memref<128x128xf32, #tpu.memory_space<vmem>>, vector<128x128xf32>,
    %c0_i32_8 = arith.constant 0 : i32
    %9 = arith.cmpi eq, %arg2, %c0_i32_8 : i32
    %10 = arith.extui %9 : i1 to i32
    %c0_i32_9 = arith.constant 0 : i32
    %11 = arith.cmpi ne, %10, %c0_i32_9 : i32
    scf.if %11 {
      %c0_10 = arith.constant 0 : index
      %c0_11 = arith.constant 0 : index
      %12 = vector.load %arg7[%c0_10, %c0_11] : memref<128x128xf32, #tpu.memory_space<vmem>>, vector<128x128xf32>
      %c0_12 = arith.constant 0 : index
      %c0_13 = arith.constant 0 : index
      %13 = vector.load %arg5[%c0_12, %c0_13] : memref<1x128xf32, #tpu.memory_space<vmem>>, vector<1x128xf32>
      %14 = vector.broadcast %13 : vector<1x128xf32> to vector<128x128xf32>
      %15 = arith.addf %12, %14 : vector<128x128xf32>
      %16 = arith.truncf %15 : vector<128x128xf32> to vector<128x128xbf16>
      %c0_14 = arith.constant 0 : index
      %c0_15 = arith.constant 0 : index
      %17 = vector.load %arg6[%c0_14, %c0_15] : memref<128x128xbf16, #tpu.memory_space<vmem>>, vector<128x128xbf16>
      tpu.vector_store %arg6[%c0_14, %c0_15], %16 {strides = array<i32>} : memref<128x128xbf16, #tpu.memory_space<vmem>>, vector<128x128xbf16>,
    } else {
    }
    return
  }
  func.func @transform_0(%arg0: i32, %arg1: i32, %arg2: i32) -> (i32, i32) {
    %c0_i32 = arith.constant 0 : i32
    return %arg0, %arg2 : i32, i32
  }
  func.func @transform_1(%arg0: i32, %arg1: i32, %arg2: i32) -> (i32, i32) {
    %c0_i32 = arith.constant 0 : i32
    return %arg2, %arg1 : i32, i32
  }
  func.func @transform_2(%arg0: i32, %arg1: i32, %arg2: i32) -> (i32, i32) {
    %c0_i32 = arith.constant 0 : i32
    %c0_i32_0 = arith.constant 0 : i32
    return %c0_i32, %arg1 : i32, i32
  }
  func.func @transform_3(%arg0: i32, %arg1: i32, %arg2: i32) -> (i32, i32) {
    %c0_i32 = arith.constant 0 : i32
    return %arg0, %arg1 : i32, i32
  }
}

</mosaic_0001>

<bundles_post_ra>
// kernel: tpu_custom_call.1
= control target key start
LH: loop header
LB: loop body
LE: loop exit
PB: predicated region body
PF: predicated region fallthrough
CT: control target
= control target key end

     0   :  { %8 = vsyncpa [#allocation4], 0  ;;  %s803_s0 = inlined_call_operand.hbm [shape: bf16[128,128], index: 0, kind: input, shape index: {}]   ;;  %s804_s1 = inlined_call_operand.hbm [shape: bf16[128,128], index: 1, kind: input, shape index: {}]   ;;  %s805_s2 = inlined_call_operand.vmem [shape: f32[1,128], index: 2, kind: input, shape index: {}]   ;;  %s806_s3 = inlined_call_operand.hbm [shape: bf16[128,128], index: 3, kind: output, shape index: {}]  }
   0x1   :  { %9 = vsyncpa [#allocation7], 0 }
   0x2   :  { %10 = vsyncpa [#allocation5], 0  ;;  %s730_s12 = smov [#allocation3]   ;;  %s658_s16 = scalar_lea.hbm %s803_s0, 1024 }
   0x3   :  { %s16_s13 = sshll.u32 %s730_s12, 4  ;;  %p659_p0 = scmp.ne.s32.totalorder %s803_s0, %s658_s16  ;;  %s17_s13 = int_to_ptr.vmem [resolvable:$true] %s16_s13 }
   0x4   :  { %p662_p1 = scmp.lt.u32.totalorder %s658_s16, %s803_s0 }
   0x6   :  { %p664_p2 = pnand %p662_p1, %p659_p0 }
   0x8   :  { %667 = shalt.err (!%p664_p2)
}
   0x9   :  { %s668_s21 = scalar_lea.vmem %s17_s13, 1024  ;;  %p673_p4 = scmp.lt.s32.totalorder %s17_s13, %s17_s13 }
   0xa   :  { %p669_p3 = scmp.ne.s32.totalorder %s17_s13, %s668_s21  ;;  %p674_p5 = scmp.lt.s32.totalorder %s668_s21, %s668_s21 }
   0xc   :  { %p675_p6 = por %p674_p5, %p673_p4 }
   0xe   :  { %p676_p7 = pnand %p675_p6, %p669_p3 }
  0x10   :  { %679 = shalt.err (!%p676_p7)
}
  0x11   :  { %s731_s22 = smov 64   ;;  %s732_s23 = smov 4  }
  0x12   :  { %22 = dma.hbm_to_vmem [thread:$0]  %s803_s0, 1024, %s17_s13, [#allocation4], %s731_s22, %s731_s22, %s732_s23  }
  0x13   :  { %s733_s26 = smov [#allocation6]   ;;  %s680_s30 = scalar_lea.hbm %s804_s1, 1024 }
  0x14   :  { %s28_s27 = sshll.u32 %s733_s26, 4  ;;  %p681_p8 = scmp.ne.s32.totalorder %s804_s1, %s680_s30  ;;  %s29_s27 = int_to_ptr.vmem [resolvable:$true] %s28_s27 }
  0x15   :  { %p684_p9 = scmp.lt.u32.totalorder %s680_s30, %s804_s1 }
  0x17   :  { %p686_p10 = pnand %p684_p9, %p681_p8 }
  0x19   :  { %689 = shalt.err (!%p686_p10)
}
  0x1a   :  { %s690_s8 = scalar_lea.vmem %s29_s27, 1024  ;;  %p695_p12 = scmp.lt.s32.totalorder %s29_s27, %s29_s27 }
  0x1b   :  { %p691_p11 = scmp.ne.s32.totalorder %s29_s27, %s690_s8  ;;  %p696_p13 = scmp.lt.s32.totalorder %s690_s8, %s690_s8 }
  0x1d   :  { %p697_p0 = por %p696_p13, %p695_p12 }
  0x1f   :  { %p698_p1 = pnand %p697_p0, %p691_p11 }
  0x21   :  { %701 = shalt.err (!%p698_p1)
}
  0x22   :  { %34 = dma.hbm_to_vmem [thread:$0]  %s804_s1, 1024, %s29_s27, [#allocation7], %s731_s22, %s731_s22, %s732_s23  }
  0x23   :  { %724 = dma.done.wait [#allocation4], 1024  }
  0x24   :  { %725 = vsyncadd [#allocation4], 4294966272 }
  0x25   :  { %726 = dma.done.wait [#allocation7], 1024  }
  0x26   :  { %727 = vsyncadd [#allocation7], 4294966272  ;;  %v642_v0 = vld [vmem:[#allocation6] sm:$0xff]   ;;  %v643_v1 = vld [vmem:[#allocation6 + $0x8] sm:$0xff]  }
  0x27   :  { %589 = vmatprep.subr.bf16.mxu0 %v642_v0  ;;  %621 = vmatprep.subr.bf16.mxu1 %v642_v0  ;;  %v644_v2 = vld [vmem:[#allocation6 + $0x10] sm:$0xff]   ;;  %v645_v3 = vld [vmem:[#allocation6 + $0x18] sm:$0xff]   ;;  %v650_v4 = vld [vmem:[#allocation3] sm:$0xff]  }
  0x28   :  { %590 = vmatpush3.bf16.msra.mxu0 %v642_v0  ;;  %629 = vmatpush3.bf16.msra.mxu1 %v642_v0  ;;  %v651_v5 = vld [vmem:[#allocation3 + $0x20] sm:$0xff]   ;;  %v647_v7 = vld [vmem:[#allocation6 + $0x28] sm:$0xff]   ;;  %v648_v8 = vld [vmem:[#allocation6 + $0x30] sm:$0xff]  }
  0x29   :  { %591 = vmatprep.subr.bf16.mxu0 %v643_v1  ;;  %622 = vmatprep.subr.bf16.mxu1 %v643_v1  ;;  %v646_v6 = vld [vmem:[#allocation6 + $0x20] sm:$0xff]   ;;  %v649_v9 = vld [vmem:[#allocation6 + $0x38] sm:$0xff]   ;;  %v652_v10 = vld [vmem:[#allocation3 + $0x8] sm:$0xff]  }
  0x2a   :  { %605 = vmatprep.mubr.bf16.mxu0 %v650_v4  ;;  %613 = vmatprep.mubr.bf16.mxu1 %v651_v5  ;;  %v653_v11 = vld [vmem:[#allocation3 + $0x28] sm:$0xff]   ;;  %v654_v12 = vld [vmem:[#allocation3 + $0x10] sm:$0xff]   ;;  %v656_v14 = vld [vmem:[#allocation3 + $0x18] sm:$0xff]  }
  0x2b   :  { %v655_v13 = vld [vmem:[#allocation3 + $0x30] sm:$0xff]   ;;  %v657_v15 = vld [vmem:[#allocation3 + $0x38] sm:$0xff]   ;;  %v493_v17 = vld [vmem:[%s805_s2] ss:$0 sm:$0xff]  ;;  %s734_s2 = smov [#allocation8]  }
  0x2c   :  { %592 = vmatpush3.bf16.msra.mxu0 %v643_v1  ;;  %630 = vmatpush3.bf16.msra.mxu1 %v643_v1  ;;  %s464_s11 = sshll.u32 %s734_s2, 4  ;;  %s465_s11 = int_to_ptr.vmem [resolvable:$true] %s464_s11 }
  0x2d   :  { %593 = vmatprep.subr.bf16.mxu0 %v644_v2  ;;  %623 = vmatprep.subr.bf16.mxu1 %v644_v2  ;;  %s702_s12 = scalar_lea.vmem %s465_s11, 1024  ;;  %p707_p3 = scmp.lt.s32.totalorder %s465_s11, %s465_s11 }
  0x2e   :  { %p703_p2 = scmp.ne.s32.totalorder %s465_s11, %s702_s12  ;;  %p708_p4 = scmp.lt.s32.totalorder %s702_s12, %s702_s12 }
  0x30   :  { %594 = vmatpush3.bf16.msra.mxu0 %v644_v2  ;;  %631 = vmatpush3.bf16.msra.mxu1 %v644_v2  ;;  %p709_p5 = por %p708_p4, %p707_p3 }
  0x31   :  { %595 = vmatprep.subr.bf16.mxu0 %v645_v3  ;;  %624 = vmatprep.subr.bf16.mxu1 %v645_v3 }
  0x32   :  { %p710_p6 = pnand %p709_p5, %p703_p2 }
  0x34   :  { %596 = vmatpush3.bf16.msra.mxu0 %v645_v3  ;;  %632 = vmatpush3.bf16.msra.mxu1 %v645_v3 }
  0x35   :  { %597 = vmatprep.subr.bf16.mxu0 %v646_v6  ;;  %625 = vmatprep.subr.bf16.mxu1 %v646_v6 }
  0x38   :  { %598 = vmatpush3.bf16.msra.mxu0 %v646_v6  ;;  %633 = vmatpush3.bf16.msra.mxu1 %v646_v6 }
  0x39   :  { %599 = vmatprep.subr.bf16.mxu0 %v647_v7  ;;  %626 = vmatprep.subr.bf16.mxu1 %v647_v7 }
  0x3c   :  { %600 = vmatpush3.bf16.msra.mxu0 %v647_v7  ;;  %634 = vmatpush3.bf16.msra.mxu1 %v647_v7 }
  0x3d   :  { %601 = vmatprep.subr.bf16.mxu0 %v648_v8  ;;  %627 = vmatprep.subr.bf16.mxu1 %v648_v8 }
  0x40   :  { %602 = vmatpush3.bf16.msra.mxu0 %v648_v8  ;;  %635 = vmatpush3.bf16.msra.mxu1 %v648_v8 }
  0x41   :  { %603 = vmatprep.subr.bf16.mxu0 %v649_v9  ;;  %628 = vmatprep.subr.bf16.mxu1 %v649_v9 }
  0x44   :  { %604 = vmatpush3.bf16.msra.mxu0 %v649_v9  ;;  %636 = vmatpush3.bf16.msra.mxu1 %v649_v9 }
  0x47   :  { %606 = vmatmul.mubr.bf16.vlgmr.msra.gmra.mrb[0].mxu0 %v652_v10  ;;  %614 = vmatmul.mubr.bf16.vlgmr.msra.gmra.mrb[0].mxu1 %v653_v11 }
  0x48   :  { %609 = vmatprep.mubr.bf16.mxu0 %v654_v12  ;;  %617 = vmatprep.mubr.bf16.mxu1 %v655_v13 }
  0x4f   :  { %610 = vmatmul.mubr.bf16.gmra.mrb[4].mxu0 %v656_v14  ;;  %618 = vmatmul.mubr.bf16.gmra.mrb[4].mxu1 %v657_v15 }
 0x11a   :  { %v607_v16 = vpop.f32.mrb[0].mxu0  ;;  %v615_v18 = vpop.f32.mrb[0].mxu1 }
 0x11b   :  { %v242_v19 = vpop.f32.mrb[1].mxu0  ;;  %v274_v20 = vpop.f32.mrb[1].mxu1  ;;  %v365_v23 = vadd.f32 %v607_v16, %v493_v17  ;;  %v373_v24 = vadd.f32 %v615_v18, %v493_v17 }
 0x11c   :  { %v608_v21 = vpop.f32.mrb[2].mxu0  ;;  %v616_v22 = vpop.f32.mrb[2].mxu1  ;;  %v363_v29 = vadd.f32 %v493_v17, %v242_v19  ;;  %v371_v30 = vadd.f32 %v493_v17, %v274_v20 }
 0x11d   :  { %v366_v25 = vadd.f32 %v608_v21, %v493_v17  ;;  %v374_v26 = vadd.f32 %v616_v22, %v493_v17  ;;  %v245_v27 = vpop.f32.mrb[3].mxu0  ;;  %v277_v28 = vpop.f32.mrb[3].mxu1 }
 0x11e   :  { %v364_v31 = vadd.f32 %v493_v17, %v245_v27  ;;  %v372_v32 = vadd.f32 %v493_v17, %v277_v28 }
 0x11f   :  { %v534_v33 = vpack.c.bf16 %v366_v25, %v365_v23  ;;  %v554_v34 = vpack.c.bf16 %v374_v26, %v373_v24 }
 0x120   :  { %v529_v35 = vpack.c.bf16 %v364_v31, %v363_v29  ;;  %v549_v36 = vpack.c.bf16 %v372_v32, %v371_v30 }
 0x121   :  { %566 = vst [vmem:[#allocation8 + $0x8] sm:$0xff] %v534_v33   ;;  %570 = vst [vmem:[#allocation8 + $0x28] sm:$0xff] %v554_v34  }
 0x122   :  { %530 = vst [vmem:[#allocation8] sm:$0xff] %v529_v35   ;;  %569 = vst [vmem:[#allocation8 + $0x20] sm:$0xff] %v549_v36   ;;  %v611_v37 = vpop.f32.mrb[4].mxu0  ;;  %v619_v38 = vpop.f32.mrb[4].mxu1 }
 0x123   :  { %v258_v39 = vpop.f32.mrb[5].mxu0  ;;  %v290_v40 = vpop.f32.mrb[5].mxu1  ;;  %v369_v43 = vadd.f32 %v611_v37, %v493_v17  ;;  %v377_v44 = vadd.f32 %v619_v38, %v493_v17 }
 0x124   :  { %v612_v41 = vpop.f32.mrb[6].mxu0  ;;  %v620_v42 = vpop.f32.mrb[6].mxu1  ;;  %v367_v49 = vadd.f32 %v493_v17, %v258_v39  ;;  %v375_v50 = vadd.f32 %v493_v17, %v290_v40 }
 0x125   :  { %v370_v45 = vadd.f32 %v612_v41, %v493_v17  ;;  %v378_v46 = vadd.f32 %v620_v42, %v493_v17  ;;  %v261_v47 = vpop.f32.mrb[7].mxu0  ;;  %v293_v48 = vpop.f32.mrb[7].mxu1 }
 0x126   :  { %v368_v51 = vadd.f32 %v493_v17, %v261_v47  ;;  %v376_v52 = vadd.f32 %v493_v17, %v293_v48 }
 0x127   :  { %v544_v53 = vpack.c.bf16 %v370_v45, %v369_v43  ;;  %v564_v54 = vpack.c.bf16 %v378_v46, %v377_v44 }
 0x128   :  { %v539_v55 = vpack.c.bf16 %v368_v51, %v367_v49  ;;  %v559_v56 = vpack.c.bf16 %v376_v52, %v375_v50 }
 0x129   :  { %568 = vst [vmem:[#allocation8 + $0x18] sm:$0xff] %v544_v53   ;;  %572 = vst [vmem:[#allocation8 + $0x38] sm:$0xff] %v564_v54  }
 0x12a   :  { %567 = vst [vmem:[#allocation8 + $0x10] sm:$0xff] %v539_v55   ;;  %571 = vst [vmem:[#allocation8 + $0x30] sm:$0xff] %v559_v56  }
 0x12b   :  { %713 = shalt.err (!%p710_p6)
}
 0x12c   :  { %s714_s15 = scalar_lea.hbm %s806_s3, 1024 }
 0x12d   :  { %p715_p7 = scmp.ne.s32.totalorder %s806_s3, %s714_s15  ;;  %p718_p8 = scmp.lt.u32.totalorder %s714_s15, %s806_s3 }
 0x12f   :  { %p720_p9 = pnand %p718_p8, %p715_p7 }
 0x131   :  { %723 = shalt.err (!%p720_p9)
}
 0x132   :  { %470 = dma.vmem_to_hbm [thread:$0]  %s465_s11, 1024, %s806_s3, [#allocation5], %s731_s22, %s731_s22, %s732_s23  }
 0x133   :  { %728 = dma.done.wait [#allocation5], 1024  }
 0x134   :  { %729 = vsyncadd [#allocation5], 4294966272 }
 0x135   :  { %474 = vsyncpa [#allocation4], 1 }
 0x136   :  { %475 = vsyncpa [#allocation7], 1 }
 0x137   :  { %476 = vsyncpa [#allocation5], 1 }

</bundles_post_ra>
